<compile_context>
chip_gen: v6e
topology: v6e:2x2x1
jax: 0.10.0
libtpu: 0.0.40
codegen_flags: <defaults>
</compile_context>

<pallas_src>
import functools

import jax
import jax.numpy as jnp
from jax.experimental import pallas as pl
from jax.experimental.pallas import tpu as pltpu


DEFAULT_TM = 512
DEFAULT_TN = 512
DEFAULT_TK = 1024


def _round_up(v, m):
    return (v + m - 1) // m * m


def _fit_tile(dim, tile_max, align):
    """Pick a tile size <= tile_max, multiple of `align`, minimizing pad waste."""
    d = _round_up(max(dim, 1), align)
    if d <= tile_max:
        return d
    steps = -(-d // tile_max)                 # ceil(d / tile_max)
    return _round_up(-(-d // steps), align)   # smallest aligned tile keeping step count


def _binary_linear_kernel(x_ref, w_ref, b_ref, o_ref):
    """One (i, j, k) step: o[i,j] += x[i,k] @ bf16(w_int8[k,j]); add bias at last k."""
    k = pl.program_id(2)

    @pl.when(k == 0)
    def _init():
        o_ref[...] = jnp.zeros_like(o_ref)

    # int8 {-1,0,+1} weights upcast to bf16 in-register (free VALU slot under MXU);
    # accumulate in f32 directly into the resident output block.
    o_ref[...] += jnp.dot(
        x_ref[...],
        w_ref[...].astype(jnp.bfloat16),
        preferred_element_type=jnp.float32,
    )

    @pl.when(k == pl.num_programs(2) - 1)
    def _finalize():
        o_ref[...] += b_ref[...]


def prepare_binary_linear(weight, bias, *, tn=DEFAULT_TN, tk=DEFAULT_TK):
    """One-time (per parameter value) prep, hoisted out of the per-call forward:
    binarize, transpose to (K, N), cast to int8, pad N/K to tile multiples."""
    N, K = weight.shape
    assert bias.shape == (N,)
    tn = _fit_tile(N, tn, 128)
    tk = _fit_tile(K, tk, 128)
    Np = _round_up(N, tn)
    Kp = _round_up(K, tk)

    # sign(0) == 0 matches torch.sign; +/-1/0 is exact in int8 (and in bf16 after upcast).
    w_bin = jnp.sign(weight).T.astype(jnp.int8)                 # (K, N)
    if (Kp, Np) != (K, N):
        w_bin = jnp.pad(w_bin, ((0, Kp - K), (0, Np - N)))      # zero pad: no effect on dot
    bias2d = bias.reshape(1, N).astype(jnp.float32)
    if Np != N:
        bias2d = jnp.pad(bias2d, ((0, 0), (0, Np - N)))

    return {"w_bin": w_bin, "bias": bias2d, "n_out": N, "tn": tn, "tk": tk}


@functools.partial(jax.jit, static_argnames=("n_out", "tm_max", "tn", "tk"))
def _binary_linear_fwd(x, w_bin, bias2d, *, n_out, tm_max, tn, tk):
    B, K = x.shape
    Kp, Np = w_bin.shape

    # Activations to bf16 (MXU input); weights at +/-1 are exact either way.
    x_c = x.astype(jnp.bfloat16)

    # M tile fit to the batch (16-row bf16 sublane alignment) to avoid padding a small
    # batch up to a full 512-row tile.
    tm = _fit_tile(B, tm_max, 16)
    Bp = _round_up(B, tm)
    if (Bp, Kp) != (B, K):
        x_c = jnp.pad(x_c, ((0, Bp - B), (0, Kp - K)))

    grid = (Bp // tm, Np // tn, Kp // tk)

    out = pl.pallas_call(
        _binary_linear_kernel,
        out_shape=jax.ShapeDtypeStruct((Bp, Np), jnp.float32),
        grid_spec=pltpu.PrefetchScalarGridSpec(
            num_scalar_prefetch=0,
            grid=grid,
            in_specs=[
                pl.BlockSpec((tm, tk), lambda i, j, k: (i, k)),   # x tile (bf16)
                pl.BlockSpec((tk, tn), lambda i, j, k: (k, j)),   # binarized weight tile (int8)
                pl.BlockSpec((1, tn), lambda i, j, k: (0, j)),    # bias tile (f32, last-k only)
            ],
            out_specs=pl.BlockSpec((tm, tn), lambda i, j, k: (i, j)),  # resident f32 accumulator
        ),
        compiler_params=pltpu.CompilerParams(
            dimension_semantics=("parallel", "parallel", "arbitrary"),
            vmem_limit_bytes=48 * 1024 * 1024,  # safe on v5e/v6e (128 MiB) and v7x (64 MiB)
        ),
    )(x_c, w_bin, bias2d)

    return out[:B, :n_out]


def binary_linear_apply(x, params, *, tm_max=DEFAULT_TM):
    """Forward pass using pre-binarized / pre-padded parameters (inference hot path)."""
    return _binary_linear_fwd(
        x, params["w_bin"], params["bias"],
        n_out=params["n_out"], tm_max=tm_max,
        tn=params["tn"], tk=params["tk"],
    )


def binary_linear(x, weight, bias, *, tm=DEFAULT_TM, tn=DEFAULT_TN, tk=DEFAULT_TK):
    """Convenience one-shot API matching the PyTorch module call (prep + forward)."""
    params = prepare_binary_linear(weight, bias, tn=tn, tk=tk)
    return binary_linear_apply(x, params, tm_max=tm)


if __name__ == "__main__":
    # Deterministic parameter / input construction (mirrors module __init__:
    # weight = randn(out, in) * 0.1, bias = zeros(out)).
    in_features = 32
    out_features = 16
    batch = 8

    key = jax.random.PRNGKey(0)
    kx, kw = jax.random.split(key)
    x = jax.random.normal(kx, (batch, in_features), dtype=jnp.float32)
    weight = jax.random.normal(kw, (out_features, in_features), dtype=jnp.float32) * 0.1
    bias = jnp.zeros((out_features,), dtype=jnp.float32)

    # One-time weight preparation (outside the per-call forward), then the hot path.
    params = prepare_binary_linear(weight, bias)
    out = binary_linear_apply(x, params)
    out = jax.block_until_ready(out)
    assert out.shape == (batch, out_features)

    # Reference with matched precision (x rounded to bf16, weights +/-1 exact) — tight check.
    x_bf = x.astype(jnp.bfloat16).astype(jnp.float32)
    ref_matched = x_bf @ jnp.sign(weight).T + bias
    assert jnp.allclose(out, ref_matched, atol=1e-4, rtol=1e-4)

    # Full-precision PyTorch-semantics reference — loose check (only x lost precision).
    ref_f32 = x @ jnp.sign(weight).T + bias
    assert jnp.allclose(out, ref_f32, atol=1e-1, rtol=1e-2)

    # Also exercise the one-shot convenience API.
    out2 = jax.block_until_ready(binary_linear(x, weight, bias))
    assert jnp.allclose(out, out2)

    print("KERNEL_OK")
</pallas_src>

<mosaic_0001>
module attributes {stable_mosaic.version = 11 : i64} {
  func.func @_binary_linear_kernel(%arg0: i32, %arg1: i32, %arg2: i32, %arg3: memref<16x128xbf16, #tpu.memory_space<vmem>>, %arg4: memref<128x128xi8, #tpu.memory_space<vmem>>, %arg5: memref<1x128xf32, #tpu.memory_space<vmem>>, %arg6: memref<16x128xf32, #tpu.memory_space<vmem>>) attributes {dimension_semantics = [#tpu.dimension_semantics<parallel>, #tpu.dimension_semantics<parallel>, #tpu.dimension_semantics<arbitrary>], iteration_bounds = array<i64: 1, 1, 1>, scalar_prefetch = 0 : i64, scratch_operands = 0 : i64, tpu.core_type = #tpu.core_type<tc>, window_params = [{transform_indices = @transform_0, window_bounds = array<i64: 16, 128>}, {transform_indices = @transform_1, window_bounds = array<i64: 128, 128>}, {transform_indices = @transform_2, window_bounds = array<i64: 1, 128>}, {transform_indices = @transform_3, window_bounds = array<i64: 16, 128>}]} {
    %c0_i32 = arith.constant 0 : i32
    %0 = arith.cmpi eq, %arg2, %c0_i32 : i32
    %1 = arith.extui %0 : i1 to i32
    %c0_i32_0 = arith.constant 0 : i32
    %2 = arith.cmpi ne, %1, %c0_i32_0 : i32
    scf.if %2 {
      %cst_10 = arith.constant 0.000000e+00 : f32
      %13 = vector.broadcast %cst_10 : f32 to vector<16x128xf32>
      %c0_11 = arith.constant 0 : index
      %c0_12 = arith.constant 0 : index
      %14 = vector.load %arg6[%c0_11, %c0_12] : memref<16x128xf32, #tpu.memory_space<vmem>>, vector<16x128xf32>
      tpu.vector_store %arg6[%c0_11, %c0_12], %13 {strides = array<i32>} : memref<16x128xf32, #tpu.memory_space<vmem>>, vector<16x128xf32>,
    } else {
    }
    %c0 = arith.constant 0 : index
    %c0_1 = arith.constant 0 : index
    %3 = vector.load %arg6[%c0, %c0_1] : memref<16x128xf32, #tpu.memory_space<vmem>>, vector<16x128xf32>
    %c0_2 = arith.constant 0 : index
    %c0_3 = arith.constant 0 : index
    %4 = vector.load %arg3[%c0_2, %c0_3] : memref<16x128xbf16, #tpu.memory_space<vmem>>, vector<16x128xbf16>
    %c0_4 = arith.constant 0 : index
    %c0_5 = arith.constant 0 : index
    %5 = vector.load %arg4[%c0_4, %c0_5] : memref<128x128xi8, #tpu.memory_space<vmem>>, vector<128x128xi8>
    %6 = arith.sitofp %5 : vector<128x128xi8> to vector<128x128xbf16>
    %cst = arith.constant dense<0.000000e+00> : vector<16x128xf32>
    %7 = tpu.matmul %4, %6, %cst {dimension_numbers = #tpu.dot_dimension_numbers<[1], [0], [0], [1], [0, 0, 1, 1], [], []>} : vector<16x128xbf16>, vector<128x128xbf16>, vector<16x128xf32> -> vector<16x128xf32>
    %8 = arith.addf %3, %7 : vector<16x128xf32>
    %c0_6 = arith.constant 0 : index
    %c0_7 = arith.constant 0 : index
    %9 = vector.load %arg6[%c0_6, %c0_7] : memref<16x128xf32, #tpu.memory_space<vmem>>, vector<16x128xf32>
    tpu.vector_store %arg6[%c0_6, %c0_7], %8 {strides = array<i32>} : memref<16x128xf32, #tpu.memory_space<vmem>>, vector<16x128xf32>,
    %c0_i32_8 = arith.constant 0 : i32
    %10 = arith.cmpi eq, %arg2, %c0_i32_8 : i32
    %11 = arith.extui %10 : i1 to i32
    %c0_i32_9 = arith.constant 0 : i32
    %12 = arith.cmpi ne, %11, %c0_i32_9 : i32
    scf.if %12 {
      %c0_10 = arith.constant 0 : index
      %c0_11 = arith.constant 0 : index
      %13 = vector.load %arg6[%c0_10, %c0_11] : memref<16x128xf32, #tpu.memory_space<vmem>>, vector<16x128xf32>
      %c0_12 = arith.constant 0 : index
      %c0_13 = arith.constant 0 : index
      %14 = vector.load %arg5[%c0_12, %c0_13] : memref<1x128xf32, #tpu.memory_space<vmem>>, vector<1x128xf32>
      %15 = vector.broadcast %14 : vector<1x128xf32> to vector<16x128xf32>
      %16 = arith.addf %13, %15 : vector<16x128xf32>
      %c0_14 = arith.constant 0 : index
      %c0_15 = arith.constant 0 : index
      %17 = vector.load %arg6[%c0_14, %c0_15] : memref<16x128xf32, #tpu.memory_space<vmem>>, vector<16x128xf32>
      tpu.vector_store %arg6[%c0_14, %c0_15], %16 {strides = array<i32>} : memref<16x128xf32, #tpu.memory_space<vmem>>, vector<16x128xf32>,
    } else {
    }
    return
  }
  func.func @transform_0(%arg0: i32, %arg1: i32, %arg2: i32) -> (i32, i32) {
    %c0_i32 = arith.constant 0 : i32
    return %arg0, %arg2 : i32, i32
  }
  func.func @transform_1(%arg0: i32, %arg1: i32, %arg2: i32) -> (i32, i32) {
    %c0_i32 = arith.constant 0 : i32
    return %arg2, %arg1 : i32, i32
  }
  func.func @transform_2(%arg0: i32, %arg1: i32, %arg2: i32) -> (i32, i32) {
    %c0_i32 = arith.constant 0 : i32
    %c0_i32_0 = arith.constant 0 : i32
    return %c0_i32, %arg1 : i32, i32
  }
  func.func @transform_3(%arg0: i32, %arg1: i32, %arg2: i32) -> (i32, i32) {
    %c0_i32 = arith.constant 0 : i32
    return %arg0, %arg1 : i32, i32
  }
}

</mosaic_0001>

<bundles_post_ra>
// kernel: _binary_linear_fwd.1
= control target key start
LH: loop header
LB: loop body
LE: loop exit
PB: predicated region body
PF: predicated region fallthrough
CT: control target
= control target key end

     0   :  { %8 = vsyncpa [#allocation3], 0  ;;  %s182_s12 = smov [#allocation2]   ;;  %s222_s0 = inlined_call_operand.vmem [shape: bf16[16,128], index: 0, kind: input, shape index: {}]   ;;  %s223_s1 = inlined_call_operand.hbm [shape: s8[128,128], index: 1, kind: input, shape index: {}]   ;;  %s224_s2 = inlined_call_operand.vmem [shape: f32[1,128], index: 2, kind: input, shape index: {}]   ;;  %s225_s3 = inlined_call_operand.vmem [shape: f32[16,128], index: 3, kind: output, shape index: {}]  }
   0x1   :  { %s16_s13 = sshll.u32 %s182_s12, 4  ;;  %s17_s13 = int_to_ptr.vmem [resolvable:$true] %s16_s13 }
   0x2   :  { %s168_s14 = scalar_lea.vmem %s17_s13, 512  ;;  %p173_p1 = scmp.lt.s32.totalorder %s17_s13, %s17_s13 }
   0x3   :  { %p169_p0 = scmp.ne.s32.totalorder %s17_s13, %s168_s14  ;;  %p174_p2 = scmp.lt.s32.totalorder %s168_s14, %s168_s14 }
   0x5   :  { %p175_p3 = por %p174_p2, %p173_p1 }
   0x7   :  { %p176_p4 = pnand %p175_p3, %p169_p0 }
   0x9   :  { %179 = shalt.err (!%p176_p4)
}
   0xa   :  { %s183_s15 = smov 128   ;;  %s184_s16 = smov 8  }
   0xb   :  { %22 = dma.hbm_to_vmem [thread:$0]  %s223_s1, 512, %s17_s13, [#allocation3], %s183_s15, %s183_s15, %s184_s16  }
   0xc   :  { %180 = dma.done.wait [#allocation3], 512  }
   0xd   :  { %181 = vsyncadd [#allocation3], 4294966784  ;;  %v185_v0 = vmov 0.0   ;;  %vm186_vm0 = vmmov 0   ;;  %v42_v1 = vld [vmem:[#allocation2 + $0x18] sm:$0xff]  ;;  %v41_v4 = vld [vmem:[#allocation2 + $0x10] sm:$0xff] }
   0xe   :  { %134 = vmatprep.subr.bf16.mxu0 %v185_v0  ;;  %150 = vmatprep.mubr.msk.bf16.mxu0 %vm186_vm0, %v185_v0  ;;  %v50_v2 = vunpack.c.h.s8.bf16 %v42_v1  ;;  %v49_v3 = vunpack.c.l.s8.bf16 %v42_v1  ;;  %v48_v5 = vunpack.c.h.s8.bf16 %v41_v4  ;;  %v47_v6 = vunpack.c.l.s8.bf16 %v41_v4  ;;  %v40_v7 = vld [vmem:[#allocation2 + $0x8] sm:$0xff]  ;;  %v39_v10 = vld [vmem:[#allocation2] sm:$0xff] }
   0xf   :  { %v46_v8 = vunpack.c.h.s8.bf16 %v40_v7  ;;  %v45_v9 = vunpack.c.l.s8.bf16 %v40_v7  ;;  %v44_v11 = vunpack.c.h.s8.bf16 %v39_v10  ;;  %v43_v12 = vunpack.c.l.s8.bf16 %v39_v10  ;;  %v159_v13 = vld [vmem:[%s222_s0] sm:$0xff]  }
  0x10   :  { %135 = vmatpush3.bf16.msra.mxu0 %v50_v2  ;;  %v124_v15 = vld [vmem:[%s224_s2] ss:$0 sm:$0xff] }
  0x11   :  { %136 = vmatprep.subr.bf16.mxu0 %v185_v0 }
  0x14   :  { %137 = vmatpush3.bf16.msra.mxu0 %v49_v3 }
  0x15   :  { %138 = vmatprep.subr.bf16.mxu0 %v185_v0 }
  0x18   :  { %139 = vmatpush3.bf16.msra.mxu0 %v48_v5 }
  0x19   :  { %140 = vmatprep.subr.bf16.mxu0 %v185_v0 }
  0x1c   :  { %141 = vmatpush3.bf16.msra.mxu0 %v47_v6 }
  0x1d   :  { %142 = vmatprep.subr.bf16.mxu0 %v185_v0 }
  0x20   :  { %143 = vmatpush3.bf16.msra.mxu0 %v46_v8 }
  0x21   :  { %144 = vmatprep.subr.bf16.mxu0 %v185_v0 }
  0x24   :  { %145 = vmatpush3.bf16.msra.mxu0 %v45_v9 }
  0x25   :  { %146 = vmatprep.subr.bf16.mxu0 %v185_v0 }
  0x28   :  { %147 = vmatpush3.bf16.msra.mxu0 %v44_v11 }
  0x29   :  { %148 = vmatprep.subr.bf16.mxu0 %v185_v0 }
  0x2c   :  { %149 = vmatpush3.bf16.msra.mxu0 %v43_v12 }
  0x2f   :  { %151 = vmatmul.mubr.bf16.vlgmr.msra.gmra.mxu0 %v159_v13 }
  0xef   :  { %v91_v14 = vpop.f32.mrf.mxu0 }
  0xf0   :  { %v114_v17 = vadd.f32 %v124_v15, %v91_v14 }
  0xf1   :  { %v152_v16 = vpop.f32.mrf.mxu0 }
  0xf2   :  { %116 = vst [vmem:[%s225_s3] sm:$0xff] %v114_v17 }
  0xf3   :  { %v94_v18 = vpop.f32.mrf.mxu0 }
  0xf4   :  { %v115_v20 = vadd.f32 %v124_v15, %v94_v18 }
  0xf5   :  { %v153_v19 = vpop.f32.mrf.mxu0 }
  0xf6   :  { %117 = vst [vmem:[%s225_s3 + $0x8] sm:$0xff] %v115_v20 }
  0xf7   :  { %122 = vsyncpa [#allocation3], 1 }

</bundles_post_ra>
